<compile_context>
chip_gen: v5e
topology: v5e:2x2
jax: 0.10.0
libtpu: 0.0.40
codegen_flags: <defaults>
</compile_context>

<pallas_src>
import numpy as np
import jax
import jax.numpy as jnp
from jax.experimental import pallas as pl
from jax.experimental.pallas import tpu as pltpu

_LANE = 128
_SUBLANE = 8
_TARGET_TILE_BYTES = 4 * 1024 * 1024  # per-buffer VMEM target (~16 MiB double-buffered in+out)


def _round_up(a, b):
    return ((a + b - 1) // b) * b


def _percentile_norm_kernel(params_ref, x_ref, o_ref):
    # params_ref: SMEM f32[2] = [low_val, inv_range], inv_range = 1/(high-low+eps)
    low = params_ref[0]
    inv_range = params_ref[1]
    x = x_ref[...].astype(jnp.float32)            # upcast in-register (cheap VPU)
    y = jnp.clip((x - low) * inv_range, 0.0, 1.0)
    o_ref[...] = y.astype(o_ref.dtype)            # downcast at the store (native dtype out)


@jax.jit
def _percentile_normalize_impl(x, params):
    """params = f32[3] = [low_val, high_val, eps] (runtime data -> no recompile on refit)."""
    orig_shape = x.shape
    orig_dtype = x.dtype
    itemsize = jnp.dtype(orig_dtype).itemsize

    low = params[0]
    inv_range = 1.0 / (params[1] - params[0] + params[2])
    kparams = jnp.stack([low, inv_range]).astype(jnp.float32)

    total = int(np.prod(orig_shape)) if orig_shape else 1
    flat = x.reshape((total,))

    aligned = (total // _LANE) * _LANE
    if aligned == 0:
        # Tiny array (< 128 elements): plain XLA, a kernel launch is pure overhead.
        y = jnp.clip((flat.astype(jnp.float32) - low) * inv_range, 0.0, 1.0)
        return y.astype(orig_dtype).reshape(orig_shape)

    rows = aligned // _LANE
    bulk2d = (flat if aligned == total else flat[:aligned]).reshape((rows, _LANE))

    # dtype-aware row granularity: 8 sublanes f32, 16 bf16, 32 int8/fp8.
    sub = _SUBLANE * max(1, 4 // itemsize)
    tile_r_target = max(sub, (_TARGET_TILE_BYTES // (_LANE * itemsize)) // sub * sub)

    if rows > tile_r_target:
        tile_r = tile_r_target
    elif rows >= 2 * sub:
        # Guarantee >= 2 tiles so both v7x TensorCores get work on the parallel axis.
        tile_r = _round_up(pl.cdiv(rows, 2), sub)
    else:
        tile_r = rows  # block == full array dims (allowed even if not a multiple of 8)

    grid = (pl.cdiv(rows, tile_r),)  # last block may be partial; Pallas masks OOB writes

    out2d = pl.pallas_call(
        _percentile_norm_kernel,
        out_shape=jax.ShapeDtypeStruct((rows, _LANE), orig_dtype),
        grid=grid,
        in_specs=[
            pl.BlockSpec(memory_space=pltpu.MemorySpace.SMEM),       # scalar params
            pl.BlockSpec((tile_r, _LANE), lambda i: (i, 0)),         # input tile
        ],
        out_specs=pl.BlockSpec((tile_r, _LANE), lambda i: (i, 0)),   # output tile
        compiler_params=pltpu.CompilerParams(
            dimension_semantics=("parallel",),
            vmem_limit_bytes=32 * 1024 * 1024,
        ),
        cost_estimate=pl.CostEstimate(
            flops=4 * rows * _LANE,
            transcendentals=0,
            bytes_accessed=2 * rows * _LANE * itemsize,
        ),
    )(kparams, bulk2d)

    if aligned == total:
        return out2d.reshape(orig_shape)

    # Ragged tail (< 128 elements): tiny plain-XLA elementwise op.
    tail = flat[aligned:]
    tail_out = jnp.clip((tail.astype(jnp.float32) - low) * inv_range, 0.0, 1.0).astype(orig_dtype)
    return jnp.concatenate([out2d.reshape((aligned,)), tail_out]).reshape(orig_shape)


def percentile_normalize(x, low_val, high_val, eps=1e-8):
    """Applies percentile normalization elementwise via a tiled Pallas TPU kernel."""
    params = jnp.stack([
        jnp.asarray(low_val, dtype=jnp.float32),
        jnp.asarray(high_val, dtype=jnp.float32),
        jnp.asarray(eps, dtype=jnp.float32),
    ])
    return _percentile_normalize_impl(x, params)


def _fit_percentiles(x, lower_percentile=5, upper_percentile=95):
    """Equivalent of PercentileNormalizer.fit (host-side, matches np.percentile)."""
    # TODO(synk): fit() mirrors the PyTorch spec's host-side np.percentile; it could be
    # moved on-device (jnp.quantile) to avoid the device->host sync if ever needed.
    x_np = np.asarray(x, dtype=np.float32)
    return float(np.percentile(x_np, lower_percentile)), float(np.percentile(x_np, upper_percentile))


# TODO(synk): inverse() is a trivial affine map (x * (high-low+eps) + low); plain XLA
# suffices, no dedicated kernel provided.


if __name__ == "__main__":
    key = jax.random.PRNGKey(0)
    k1, k2, k3 = jax.random.split(key, 3)

    # 1) Aligned NCHW f32 input (2,4,16,16) -> 16 rows, 2 tiles (one per v7x core).
    x = jax.random.normal(k1, (2, 4, 16, 16), dtype=jnp.float32) * 3.0 + 1.0
    low_val, high_val = _fit_percentiles(x, 5, 95)
    out = jax.block_until_ready(percentile_normalize(x, low_val, high_val, eps=1e-8))
    ref = np.clip((np.asarray(x) - low_val) / (high_val - low_val + 1e-8), 0.0, 1.0)
    np.testing.assert_allclose(np.asarray(out), ref, rtol=1e-6, atol=1e-6)

    # 2) Ragged element count (5*7*9 = 315): kernel on aligned bulk + tiny XLA tail.
    x_odd = jax.random.normal(k2, (5, 7, 9), dtype=jnp.float32)
    lo2, hi2 = _fit_percentiles(x_odd, 5, 95)
    out_odd = jax.block_until_ready(percentile_normalize(x_odd, lo2, hi2))
    ref_odd = np.clip((np.asarray(x_odd) - lo2) / (hi2 - lo2 + 1e-8), 0.0, 1.0)
    np.testing.assert_allclose(np.asarray(out_odd), ref_odd, rtol=1e-6, atol=1e-6)

    # 3) bf16 input with a partial boundary tile (48 rows, 32-row tiles).
    x_bf = (jax.random.normal(k3, (2, 8, 24, 16), dtype=jnp.float32) * 2.0).astype(jnp.bfloat16)
    lo3, hi3 = _fit_percentiles(x_bf, 5, 95)
    out_bf = jax.block_until_ready(percentile_normalize(x_bf, lo3, hi3))
    ref_bf = np.clip((np.asarray(x_bf, dtype=np.float32) - lo3) / (hi3 - lo3 + 1e-8), 0.0, 1.0)
    np.testing.assert_allclose(np.asarray(out_bf, dtype=np.float32), ref_bf, rtol=0.0, atol=1e-2)

    print("KERNEL_OK")
</pallas_src>

<mosaic_0001>
module attributes {stable_mosaic.version = 11 : i64} {
  func.func @_percentile_norm_kernel(%arg0: i32, %arg1: memref<2xf32, #tpu.memory_space<smem>>, %arg2: memref<8x128xf32, #tpu.memory_space<vmem>>, %arg3: memref<8x128xf32, #tpu.memory_space<vmem>>) attributes {dimension_semantics = [#tpu.dimension_semantics<parallel>], iteration_bounds = array<i64: 2>, scalar_prefetch = 0 : i64, scratch_operands = 0 : i64, tpu.core_type = #tpu.core_type<tc>, window_params = [{transform_indices = @transform_0, window_bounds = array<i64: 2>}, {transform_indices = @transform_1, window_bounds = array<i64: 8, 128>}, {transform_indices = @transform_2, window_bounds = array<i64: 8, 128>}]} {
    %c0 = arith.constant 0 : index
    %0 = memref.load %arg1[%c0] : memref<2xf32, #tpu.memory_space<smem>>
    %c1 = arith.constant 1 : index
    %1 = memref.load %arg1[%c1] : memref<2xf32, #tpu.memory_space<smem>>
    %c0_0 = arith.constant 0 : index
    %c0_1 = arith.constant 0 : index
    %2 = vector.load %arg2[%c0_0, %c0_1] : memref<8x128xf32, #tpu.memory_space<vmem>>, vector<8x128xf32>
    %3 = vector.broadcast %0 : f32 to vector<8x128xf32>
    %4 = arith.subf %2, %3 : vector<8x128xf32>
    %5 = vector.broadcast %1 : f32 to vector<8x128xf32>
    %6 = arith.mulf %4, %5 : vector<8x128xf32>
    %cst = arith.constant 0.000000e+00 : f32
    %cst_2 = arith.constant 1.000000e+00 : f32
    %7 = vector.broadcast %cst : f32 to vector<8x128xf32>
    %8 = arith.maximumf %7, %6 : vector<8x128xf32>
    %9 = vector.broadcast %cst_2 : f32 to vector<8x128xf32>
    %10 = arith.minimumf %9, %8 : vector<8x128xf32>
    %c0_3 = arith.constant 0 : index
    %c0_4 = arith.constant 0 : index
    %11 = vector.load %arg3[%c0_3, %c0_4] : memref<8x128xf32, #tpu.memory_space<vmem>>, vector<8x128xf32>
    tpu.vector_store %arg3[%c0_3, %c0_4], %10 {strides = array<i32>} : memref<8x128xf32, #tpu.memory_space<vmem>>, vector<8x128xf32>,
    return
  }
  func.func @transform_0(%arg0: i32) -> i32 {
    %c0_i32 = arith.constant 0 : i32
    %c0_i32_0 = arith.constant 0 : i32
    return %c0_i32 : i32
  }
  func.func @transform_1(%arg0: i32) -> (i32, i32) {
    %c0_i32 = arith.constant 0 : i32
    %c0_i32_0 = arith.constant 0 : i32
    return %arg0, %c0_i32 : i32, i32
  }
  func.func @transform_2(%arg0: i32) -> (i32, i32) {
    %c0_i32 = arith.constant 0 : i32
    %c0_i32_0 = arith.constant 0 : i32
    return %arg0, %c0_i32 : i32, i32
  }
}

</mosaic_0001>

<bundles_post_ra>
// kernel: _percentile_normalize_impl.1
= control target key start
LH: loop header
LB: loop body
LE: loop exit
PB: predicated region body
PF: predicated region fallthrough
CT: control target
= control target key end

     0   :  { %7 = vsyncpa [#allocation3], 0  ;;  %s302_s9 = smov 0   ;;  %s322_s0 = inlined_call_operand.vmem [shape: f32[2], index: 0, kind: input, shape index: {}]   ;;  %s323_s1 = inlined_call_operand.vmem [shape: f32[16,128], index: 1, kind: input, shape index: {}]   ;;  %s324_s2 = inlined_call_operand.vmem [shape: f32[16,128], index: 2, kind: output, shape index: {}]  }
   0x1 LB: > { %s228_s10 = sadd.s32 4294967295, %s284_s9   ;;  %p230_p0 = scmp.ge.s32.totalorder %s284_s9, 1  ;;  %s284_s9 = sphi %s302_s9, %s13_s9  }
   0x2   : > { %p91_p1 = scmp.lt.s32.totalorder %s284_s9, 3  ;;  %s103_s13 = sshll.u32 %s322_s0, 4  ;;  %s104_s13 = int_to_ptr.vmem [resolvable:$true] %s103_s13 }
   0x3   : > { %p248_p3 = scmp.eq.s32.totalorder %s228_s10, 0  ;;  %s286_s14 = smov [#allocation2]  }
   0x4   : > { %p92_p2 = pnand %p230_p0, %p91_p1 }
   0x6   : > { %p244_p4 = pneg %p92_p2  ;;  %123 = sbr.rel (%p92_p2) target bundleno = 30 (0x1e), region = 28 }
   0x8   : > { %p245_p5 = pnand %p248_p3, %p244_p4 }
   0xa   : > { %247 = dma.vmem_to_smem (!%p245_p5), %s104_s13, 16, %s286_s14, [#allocation3]  }
   0xb   : > { %279 = dma.done.wait (%p248_p3), [#allocation3], 16  }
   0xc   : > { %281 = vsyncadd (%p248_p3), [#allocation3], 4294967280 }
   0xd   : > { %130 = sfence }
   0xe   : > { %p145_p6 = scmp.lt.s32.totalorder %s228_s10, 1  ;;  %s153_s15 = sld [smem:[#allocation2]] }
   0xf   : > { %s237_s16 = sld [smem:[#allocation2 + $0x1]] }
  0x10   : > { %s326_s10 = smov (!%p145_p6, %s228_s10), 1 }
  0x11   : > { %s235_s17 = sshll.u32 %s326_s10, 3 }
  0x12   : > { %s148_s20 = scalar_lea.vmem %s323_s1, %s235_s17  ;;  %s152_s23 = scalar_lea.vmem %s324_s2, %s235_s17 }
  0x13   : > { %v155_v0 = vld [vmem:[%s148_s20] sm:$0xff] }
  0x14   : > { %v156_v1 = vstv %s153_s15 }
  0x15   : > { %v157_v2 = vsub.f32 %v155_v0, %v156_v1  ;;  %v158_v3 = vstv %s237_s16 }
  0x17   : > { %v159_v4 = vmul.f32 %v158_v3, %v157_v2 }
  0x19   : > { %v160_v5 = vmax.f32 %v159_v4, 0.0 }
  0x1b   : > { %v161_v6 = vmin.f32 %v160_v5, 1.0 }
  0x1d   : > { %162 = vst [vmem:[%s152_s23] sm:$0xff] %v161_v6 }
  0x1e PF: > { %s13_s9 = sadd.s32 1, %s284_s9  }
  0x1f   : > { %p10_p7 = scmp.ge.s32.totalorder %s13_s9, 4  }
  0x21   :  { %12 = sbr.rel (!%p10_p7) target bundleno = 1 (0x1), region = 63 }
  0x26   :  { %182 = vsyncpa [#allocation3], 1 }
  0x27   :  { %184 = vsyncpa [#allocation3 + $0x1], 1 }

</bundles_post_ra>
